<compile_context>
chip_gen: v5e
topology: v5e:2x2
jax: 0.10.0
libtpu: 0.0.40
codegen_flags: <defaults>
</compile_context>

<pallas_src>
import math

import numpy as np
import jax
import jax.numpy as jnp
from jax.experimental import pallas as pl
from jax.experimental.pallas import tpu as pltpu


# ----------------------------------------------------------------------------
# helpers
# ----------------------------------------------------------------------------
def _round_up(v, m):
    return ((v + m - 1) // m) * m


def _cdiv(a, b):
    return -(-a // b)


def _phys(rows, cols, itemsize):
    """Physical VMEM bytes of a (rows, cols) block incl. lane/sublane padding."""
    sub = 8 * (4 // itemsize)          # f32: 8, bf16: 16, int8/fp8: 32
    return _round_up(max(int(rows), 1), sub) * _round_up(max(int(cols), 1), 128) * itemsize


def _footprint(b_tile, tk, tn, tcols, itemsize, out_itemsize):
    """Double-buffered VMEM bytes for one grid step (+ f32 accumulator)."""
    per_in = (_phys(b_tile, tk, itemsize) + _phys(b_tile, tcols, itemsize)
              + _phys(tk, tn, itemsize) + _phys(tcols, tn, itemsize))
    per_out = _phys(b_tile, tn, out_itemsize)
    acc = _phys(b_tile, tn, 4)
    return 2 * (per_in + per_out) + acc


def _tpu_generation():
    try:
        kind = jax.devices()[0].device_kind.lower()
    except Exception:
        return "unknown"
    if "v5 lite" in kind or "v5lite" in kind or "v5e" in kind:
        return "v5e"
    if "v6" in kind or "trillium" in kind:
        return "v6e"
    if "v7" in kind:
        return "v7x"
    return "unknown"


# Per-generation VMEM budgets / tile preferences.
#  v5e/v6e: 128 MiB physical VMEM; v7x: 64 MiB per TensorCore (be conservative).
#  v5e MXU is 128 wide -> prefer tn=128/256 and fewer batch tiles (W residency);
#  v6e/v7x MXU is 256 wide -> prefer tn>=256.
_BUDGETS = {
    "v5e": dict(vmem_limit=100 << 20, footprint_cap=56 << 20, weight_cap=20 << 20,
                tn_cands=(128, 256, 384, 512), b_cap=512, two_cores=False),
    "v6e": dict(vmem_limit=100 << 20, footprint_cap=56 << 20, weight_cap=20 << 20,
                tn_cands=(512, 384, 256, 128), b_cap=512, two_cores=False),
    "v7x": dict(vmem_limit=48 << 20, footprint_cap=22 << 20, weight_cap=8 << 20,
                tn_cands=(512, 384, 256, 128), b_cap=256, two_cores=True),
    "unknown": dict(vmem_limit=48 << 20, footprint_cap=22 << 20, weight_cap=8 << 20,
                    tn_cands=(512, 384, 256, 128), b_cap=256, two_cores=False),
}


# ----------------------------------------------------------------------------
# kernel: out = x @ W + tcat @ Bcat, with optional K (= in_features) tiling
# ----------------------------------------------------------------------------
def geps_linear_kernel(x_ref, t_ref, w_ref, bcat_ref, o_ref, acc_ref):
    k = pl.program_id(2)

    @pl.when(k == 0)
    def _():
        # tiny (TB, 2C+1) x (2C+1, TN) dot seeds the accumulator with the
        # context-weight + context-bias + bias contribution.
        acc_ref[...] = jnp.dot(t_ref[...], bcat_ref[...],
                               preferred_element_type=jnp.float32)

    # dominant MXU dot, accumulated over the K grid axis
    acc_ref[...] += jnp.dot(x_ref[...], w_ref[...],
                            preferred_element_type=jnp.float32)

    @pl.when(k == pl.num_programs(2) - 1)
    def _():
        o_ref[...] = acc_ref[...].astype(o_ref.dtype)


# ----------------------------------------------------------------------------
# parameter preparation (do once, reuse across forward calls)
# ----------------------------------------------------------------------------
def prepare_geps_params(weight, A, B, bias, bias_context, *, factor=1.0,
                        compute_dtype=None):
    in_f, out_f = weight.shape
    code = A.shape[1]
    factor = float(factor)
    cfg = _BUDGETS[_tpu_generation()]
    cdt = jnp.dtype(compute_dtype) if compute_dtype is not None else jnp.dtype(weight.dtype)
    itemsize = cdt.itemsize

    # fused small operand: [factor*B ; factor*bias_context ; bias]  (2C+1, Out)
    if bias is not None:
        bcat = jnp.concatenate([factor * B, factor * bias_context,
                                jnp.reshape(bias, (1, out_f))], axis=0)
    else:
        bcat = factor * B
    tcols = bcat.shape[0]

    # --- tn: minimize total padded output columns, tie-break by gen preference
    best = None
    for rank, tn_c in enumerate(cfg["tn_cands"]):
        key = (_round_up(out_f, tn_c), rank)
        if best is None or key < best[0]:
            best = (key, tn_c)
    tn = best[1]
    out_pad = _round_up(out_f, tn)

    # --- tk: keep the weight block within the VMEM weight cap; prefer a K
    #     grid axis over shrinking tn (keeps the MXU N dimension wide).
    if _phys(in_f, tn, itemsize) <= cfg["weight_cap"]:
        tk, in_f_pad = in_f, in_f
    else:
        tk_elems = cfg["weight_cap"] // (_round_up(tn, 128) * itemsize)
        tk = min(_round_up(in_f, 128), max(128, (tk_elems // 128) * 128))
        in_f_pad = _round_up(in_f, tk)
    nk = in_f_pad // tk

    # --- pad parameters once (zeros contribute zeros; sliced off after)
    w_p = weight
    if in_f_pad != in_f or out_pad != out_f:
        w_p = jnp.pad(weight, ((0, in_f_pad - in_f), (0, out_pad - out_f)))
    bcat_p = bcat if out_pad == out_f else jnp.pad(bcat, ((0, 0), (0, out_pad - out_f)))

    return dict(
        w=w_p.astype(cdt), bcat=bcat_p.astype(cdt), A=A,
        in_f=in_f, in_f_pad=in_f_pad, out_f=out_f, out_pad=out_pad,
        code=code, tcols=tcols, tn=tn, tk=tk, nk=nk,
        has_bias=bias is not None, compute_dtype=cdt, cfg=cfg)


# ----------------------------------------------------------------------------
# forward
# ----------------------------------------------------------------------------
def geps_linear_apply(params, x, codes):
    cfg = params["cfg"]
    cdt = params["compute_dtype"]
    itemsize = cdt.itemsize
    out_dtype = x.dtype
    out_isz = jnp.dtype(out_dtype).itemsize

    batch = x.shape[0]
    in_f, in_f_pad = params["in_f"], params["in_f_pad"]
    out_f, out_pad = params["out_f"], params["out_pad"]
    tn, tk, nk, tcols = params["tn"], params["tk"], params["nk"], params["tcols"]

    # ---- context path hoisted out of the kernel (tiny; XLA handles it) ------
    xa = x @ params["A"]                                   # (B, C)
    t = jnp.einsum('bc,bcd->bd', xa, codes)                # (B, C)
    if params["has_bias"]:
        diag = jnp.diagonal(codes, axis1=-2, axis2=-1)     # (B, C)
        tcat = jnp.concatenate([t, diag, jnp.ones((batch, 1), t.dtype)], axis=1)
    else:
        tcat = t                                           # (B, C)

    # ---- batch tiling: balanced split, then shrink to fit the VMEM budget ---
    nbt = max(1, _cdiv(batch, cfg["b_cap"]))
    b_tile = _round_up(_cdiv(batch, nbt), 8)
    while _footprint(b_tile, tk, tn, tcols, itemsize, out_isz) > cfg["footprint_cap"] \
            and b_tile > 8:
        b_tile = max(8, _round_up(b_tile // 2, 8))
    batch_pad = _round_up(batch, b_tile)
    nb = batch_pad // b_tile
    no = out_pad // tn

    # ---- v7x megacore: guarantee >=2 grid steps along a parallel axis -------
    if cfg["two_cores"] and nb * no == 1:
        if batch > 8:
            b_tile = max(8, _round_up(_cdiv(batch, 2), 8))
            batch_pad = _round_up(batch, b_tile)
            nb = batch_pad // b_tile
        elif tn in (256, 512):
            tn = tn // 2
            no = out_pad // tn

    # ---- grid ordering: minimize HBM traffic (W-resident vs x-resident) -----
    w_bytes = in_f_pad * out_pad * itemsize
    x_bytes = batch_pad * in_f_pad * itemsize
    if nk == 1:
        batch_outer = (nb * w_bytes + x_bytes) <= (w_bytes + no * x_bytes)
    else:
        batch_outer = True   # with a K axis both operands re-stream either way

    if batch_outer:
        grid = (nb, no, nk)
        x_map = lambda i, j, k: (i, k)
        t_map = lambda i, j, k: (i, 0)
        w_map = lambda i, j, k: (k, j)
        b_map = lambda i, j, k: (0, j)
        o_map = lambda i, j, k: (i, j)
    else:
        grid = (no, nb, nk)
        x_map = lambda j, i, k: (i, k)
        t_map = lambda j, i, k: (i, 0)
        w_map = lambda j, i, k: (k, j)
        b_map = lambda j, i, k: (0, j)
        o_map = lambda j, i, k: (i, j)

    # ---- pad per-call activations to tile boundaries -------------------------
    x_p = x
    if batch_pad != batch or in_f_pad != in_f:
        x_p = jnp.pad(x, ((0, batch_pad - batch), (0, in_f_pad - in_f)))
    t_p = tcat if batch_pad == batch else jnp.pad(tcat, ((0, batch_pad - batch), (0, 0)))
    x_p = x_p.astype(cdt)
    t_p = t_p.astype(cdt)

    out_padded = pl.pallas_call(
        geps_linear_kernel,
        out_shape=jax.ShapeDtypeStruct((batch_pad, out_pad), out_dtype),
        grid_spec=pltpu.PrefetchScalarGridSpec(
            num_scalar_prefetch=0,
            grid=grid,
            in_specs=[
                pl.BlockSpec((b_tile, tk), x_map),        # x
                pl.BlockSpec((b_tile, tcols), t_map),     # [t, diag(codes), 1]
                pl.BlockSpec((tk, tn), w_map),            # W
                pl.BlockSpec((tcols, tn), b_map),         # [f*B; f*bias_ctx; bias]
            ],
            out_specs=pl.BlockSpec((b_tile, tn), o_map),
            scratch_shapes=[pltpu.VMEM((b_tile, tn), jnp.float32)],
        ),
        compiler_params=pltpu.CompilerParams(
            dimension_semantics=("parallel", "parallel", "arbitrary"),
            vmem_limit_bytes=int(cfg["vmem_limit"])),
    )(x_p, t_p, params["w"], params["bcat"])

    return out_padded[:batch, :out_f]


def geps_linear(x, codes, weight, A, B, bias, bias_context, *, factor=1.0,
                compute_dtype=None):
    """Convenience wrapper: prepare params (ideally cached by the caller) + apply."""
    params = prepare_geps_params(weight, A, B, bias, bias_context,
                                 factor=factor, compute_dtype=compute_dtype)
    return geps_linear_apply(params, x, codes)


# ----------------------------------------------------------------------------
# reference (literal translation of the PyTorch forward, in float64 numpy)
# ----------------------------------------------------------------------------
def geps_linear_reference(x, codes, weight, A, B, bias, bias_context, factor):
    x = np.asarray(x, np.float64); codes = np.asarray(codes, np.float64)
    weight = np.asarray(weight, np.float64); A = np.asarray(A, np.float64)
    B = np.asarray(B, np.float64); bias = np.asarray(bias, np.float64)
    bias_context = np.asarray(bias_context, np.float64)
    weights = np.einsum('ir,brp->bip', A, codes)
    context_weights = np.einsum('bir,rj->bij', weights, B)
    context_bias = np.einsum('bii->bi', codes) @ bias_context
    combined_weight = weight[None] + factor * context_weights
    combined_bias = bias[None] + factor * context_bias
    return np.einsum('bi,bij->bj', x, combined_weight) + combined_bias


def _make_params(key, in_features, out_features, code):
    kw, ka, kb, kbias, kbc = jax.random.split(key, 5)
    bound_w = 1.0 / math.sqrt(out_features)
    bound_a = 1.0 / math.sqrt(code)
    weight = jax.random.uniform(kw, (in_features, out_features), jnp.float32,
                                -bound_w, bound_w)
    A = jax.random.uniform(ka, (in_features, code), jnp.float32, -bound_a, bound_a)
    B = jax.random.uniform(kb, (code, out_features), jnp.float32, -bound_w, bound_w)
    bias = jax.random.uniform(kbias, (out_features,), jnp.float32, -bound_w, bound_w)
    bias_context = jax.random.uniform(kbc, (code, out_features), jnp.float32,
                                      -bound_w, bound_w)
    return weight, A, B, bias, bias_context


if __name__ == "__main__":
    key = jax.random.PRNGKey(0)

    # --- main check: small shapes consistent with the module -----------------
    batch, in_features, out_features, code, factor = 16, 32, 64, 2, 1.0
    k0, k1, kp = jax.random.split(key, 3)
    weight, A, B, bias, bias_context = _make_params(kp, in_features, out_features, code)
    x = jax.random.normal(k0, (batch, in_features), jnp.float32)
    codes = jax.random.normal(k1, (batch, code, code), jnp.float32)

    out = jax.block_until_ready(
        geps_linear(x, codes, weight, A, B, bias, bias_context, factor=factor))
    ref = geps_linear_reference(x, codes, weight, A, B, bias, bias_context, factor)
    assert out.shape == (batch, out_features)
    # tolerance accommodates TPU MXU matmul rounding (reference is float64)
    np.testing.assert_allclose(np.asarray(out, np.float64), ref, rtol=1e-2, atol=1e-2)

    # --- second check: non-tile-aligned batch / out (exercises padding) ------
    batch2, out2 = 12, 40
    k2, k3, kp2 = jax.random.split(jax.random.PRNGKey(1), 3)
    w2, A2, B2, b2, bc2 = _make_params(kp2, in_features, out2, code)
    x2 = jax.random.normal(k2, (batch2, in_features), jnp.float32)
    c2 = jax.random.normal(k3, (batch2, code, code), jnp.float32)
    out_b = jax.block_until_ready(
        geps_linear(x2, c2, w2, A2, B2, b2, bc2, factor=factor))
    ref_b = geps_linear_reference(x2, c2, w2, A2, B2, b2, bc2, factor)
    np.testing.assert_allclose(np.asarray(out_b, np.float64), ref_b,
                               rtol=1e-2, atol=1e-2)

    # --- third check: bf16 compute path (recommended on v5e/v6e/v7x) ---------
    out_bf = jax.block_until_ready(
        geps_linear(x, codes, weight, A, B, bias, bias_context,
                    factor=factor, compute_dtype=jnp.bfloat16))
    np.testing.assert_allclose(np.asarray(out_bf, np.float64), ref,
                               rtol=3e-2, atol=3e-2)

    print("KERNEL_OK")
</pallas_src>

<mosaic_0001>
module attributes {stable_mosaic.version = 11 : i64} {
  func.func @geps_linear_kernel(%arg0: i32, %arg1: i32, %arg2: i32, %arg3: memref<16x32xf32, #tpu.memory_space<vmem>>, %arg4: memref<16x5xf32, #tpu.memory_space<vmem>>, %arg5: memref<32x128xf32, #tpu.memory_space<vmem>>, %arg6: memref<5x128xf32, #tpu.memory_space<vmem>>, %arg7: memref<16x128xf32, #tpu.memory_space<vmem>>, %arg8: memref<16x128xf32, #tpu.memory_space<vmem>>) attributes {dimension_semantics = [#tpu.dimension_semantics<parallel>, #tpu.dimension_semantics<parallel>, #tpu.dimension_semantics<arbitrary>], iteration_bounds = array<i64: 1, 1, 1>, scalar_prefetch = 0 : i64, scratch_operands = 1 : i64, tpu.core_type = #tpu.core_type<tc>, window_params = [{transform_indices = @transform_0, window_bounds = array<i64: 16, 32>}, {transform_indices = @transform_1, window_bounds = array<i64: 16, 5>}, {transform_indices = @transform_2, window_bounds = array<i64: 32, 128>}, {transform_indices = @transform_3, window_bounds = array<i64: 5, 128>}, {transform_indices = @transform_4, window_bounds = array<i64: 16, 128>}]} {
    %c0_i32 = arith.constant 0 : i32
    %0 = arith.cmpi eq, %arg2, %c0_i32 : i32
    %1 = arith.extui %0 : i1 to i32
    %c0_i32_0 = arith.constant 0 : i32
    %2 = arith.cmpi ne, %1, %c0_i32_0 : i32
    scf.if %2 {
      %c0_10 = arith.constant 0 : index
      %c0_11 = arith.constant 0 : index
      %12 = vector.load %arg4[%c0_10, %c0_11] : memref<16x5xf32, #tpu.memory_space<vmem>>, vector<16x5xf32>
      %c0_12 = arith.constant 0 : index
      %c0_13 = arith.constant 0 : index
      %13 = vector.load %arg6[%c0_12, %c0_13] : memref<5x128xf32, #tpu.memory_space<vmem>>, vector<5x128xf32>
      %cst_14 = arith.constant dense<0.000000e+00> : vector<16x128xf32>
      %14 = tpu.matmul %12, %13, %cst_14 {dimension_numbers = #tpu.dot_dimension_numbers<[1], [0], [0], [1], [0, 0, 1, 1], [], []>} : vector<16x5xf32>, vector<5x128xf32>, vector<16x128xf32> -> vector<16x128xf32>
      %c0_15 = arith.constant 0 : index
      %c0_16 = arith.constant 0 : index
      %15 = vector.load %arg8[%c0_15, %c0_16] : memref<16x128xf32, #tpu.memory_space<vmem>>, vector<16x128xf32>
      tpu.vector_store %arg8[%c0_15, %c0_16], %14 {strides = array<i32>} : memref<16x128xf32, #tpu.memory_space<vmem>>, vector<16x128xf32>,
    } else {
    }
    %c0 = arith.constant 0 : index
    %c0_1 = arith.constant 0 : index
    %3 = vector.load %arg8[%c0, %c0_1] : memref<16x128xf32, #tpu.memory_space<vmem>>, vector<16x128xf32>
    %c0_2 = arith.constant 0 : index
    %c0_3 = arith.constant 0 : index
    %4 = vector.load %arg3[%c0_2, %c0_3] : memref<16x32xf32, #tpu.memory_space<vmem>>, vector<16x32xf32>
    %c0_4 = arith.constant 0 : index
    %c0_5 = arith.constant 0 : index
    %5 = vector.load %arg5[%c0_4, %c0_5] : memref<32x128xf32, #tpu.memory_space<vmem>>, vector<32x128xf32>
    %cst = arith.constant dense<0.000000e+00> : vector<16x128xf32>
    %6 = tpu.matmul %4, %5, %cst {dimension_numbers = #tpu.dot_dimension_numbers<[1], [0], [0], [1], [0, 0, 1, 1], [], []>} : vector<16x32xf32>, vector<32x128xf32>, vector<16x128xf32> -> vector<16x128xf32>
    %7 = arith.addf %3, %6 : vector<16x128xf32>
    %c0_6 = arith.constant 0 : index
    %c0_7 = arith.constant 0 : index
    %8 = vector.load %arg8[%c0_6, %c0_7] : memref<16x128xf32, #tpu.memory_space<vmem>>, vector<16x128xf32>
    tpu.vector_store %arg8[%c0_6, %c0_7], %7 {strides = array<i32>} : memref<16x128xf32, #tpu.memory_space<vmem>>, vector<16x128xf32>,
    %c0_i32_8 = arith.constant 0 : i32
    %9 = arith.cmpi eq, %arg2, %c0_i32_8 : i32
    %10 = arith.extui %9 : i1 to i32
    %c0_i32_9 = arith.constant 0 : i32
    %11 = arith.cmpi ne, %10, %c0_i32_9 : i32
    scf.if %11 {
      %c0_10 = arith.constant 0 : index
      %c0_11 = arith.constant 0 : index
      %12 = vector.load %arg8[%c0_10, %c0_11] : memref<16x128xf32, #tpu.memory_space<vmem>>, vector<16x128xf32>
      %c0_12 = arith.constant 0 : index
      %c0_13 = arith.constant 0 : index
      %13 = vector.load %arg7[%c0_12, %c0_13] : memref<16x128xf32, #tpu.memory_space<vmem>>, vector<16x128xf32>
      tpu.vector_store %arg7[%c0_12, %c0_13], %12 {strides = array<i32>} : memref<16x128xf32, #tpu.memory_space<vmem>>, vector<16x128xf32>,
    } else {
    }
    return
  }
  func.func @transform_0(%arg0: i32, %arg1: i32, %arg2: i32) -> (i32, i32) {
    %c0_i32 = arith.constant 0 : i32
    return %arg0, %arg2 : i32, i32
  }
  func.func @transform_1(%arg0: i32, %arg1: i32, %arg2: i32) -> (i32, i32) {
    %c0_i32 = arith.constant 0 : i32
    %c0_i32_0 = arith.constant 0 : i32
    return %arg0, %c0_i32 : i32, i32
  }
  func.func @transform_2(%arg0: i32, %arg1: i32, %arg2: i32) -> (i32, i32) {
    %c0_i32 = arith.constant 0 : i32
    return %arg2, %arg1 : i32, i32
  }
  func.func @transform_3(%arg0: i32, %arg1: i32, %arg2: i32) -> (i32, i32) {
    %c0_i32 = arith.constant 0 : i32
    %c0_i32_0 = arith.constant 0 : i32
    return %c0_i32, %arg1 : i32, i32
  }
  func.func @transform_4(%arg0: i32, %arg1: i32, %arg2: i32) -> (i32, i32) {
    %c0_i32 = arith.constant 0 : i32
    return %arg0, %arg1 : i32, i32
  }
}

</mosaic_0001>

<bundles_post_ra>
// kernel: tpu_custom_call.1
= control target key start
LH: loop header
LB: loop body
LE: loop exit
PB: predicated region body
PF: predicated region fallthrough
CT: control target
= control target key end

     0   :  { %9 = vsyncpa [#allocation4], 0  ;;  %s267_s0 = inlined_call_operand.vmem [shape: f32[16,32], index: 0, kind: input, shape index: {}]   ;;  %s268_s1 = inlined_call_operand.vmem [shape: f32[16,5], index: 1, kind: input, shape index: {}]   ;;  %s269_s2 = inlined_call_operand.hbm [shape: f32[32,128], index: 2, kind: input, shape index: {}]   ;;  %s270_s3 = inlined_call_operand.vmem [shape: f32[5,128], index: 3, kind: input, shape index: {}]   ;;  %s271_s4 = inlined_call_operand.hbm [shape: f32[16,128], index: 4, kind: output, shape index: {}]  }
   0x1   :  { %10 = vsyncpa [#allocation5], 0  ;;  %s19_s17 = sshll.u32 %s269_s2, 4  ;;  %s211_s18 = smov [#allocation3]   ;;  %s20_s17 = int_to_ptr.hbm [resolvable:$true] %s19_s17 }
   0x2   :  { %s21_s19 = sshll.u32 %s211_s18, 4  ;;  %s212_s20 = smov 128   ;;  %s22_s19 = int_to_ptr.vmem [resolvable:$true] %s21_s19 }
   0x3   :  { %s213_s21 = smov 8  }
   0x4   :  { %27 = dma.hbm_to_vmem [thread:$0]  %s20_s17, 512, %s22_s19, [#allocation4], %s212_s20, %s212_s20, %s213_s21  }
   0x5   :  { %207 = dma.done.wait [#allocation4], 512  }
   0x6   :  { %208 = vsyncadd [#allocation4], 4294966784  ;;  %vm48_vm0 = vcmask 1044480   ;;  %v84_v0 = vld [vmem:[#allocation3 + $0x18] sm:$0xff]  ;;  %v83_v1 = vld [vmem:[#allocation3 + $0x10] sm:$0xff]  ;;  %vm41_vm1 = vcmask 39936  }
   0x7   :  { %151 = vmatpush.msra.mxu2 %v84_v0  ;;  %v40_v2 = vld [vmem:[%s270_s3] sm:$0x1f]  ;;  %104 = vmatpush.msra.mxu1 %v84_v0  ;;  %v39_v3 = vld [vmem:[%s268_s1 + $0x8] sm:$0xff]  ;;  %vm85_vm2 = vcmask 261120   ;;  %s132_s7 = sshll.u32 %s271_s4, 4  ;;  %s133_s7 = int_to_ptr.hbm [resolvable:$true] %s132_s7 }
   0x8   :  { %v82_v4 = vld [vmem:[#allocation3 + $0x8] sm:$0xff]  ;;  %150 = vmatpush.msk.msra.mxu3 %vm48_vm0, %v40_v2  ;;  %145 = vmatpush.msk.msra.mxu0 %vm48_vm0, %v40_v2  ;;  %v38_v5 = vld [vmem:[%s268_s1] sm:$0xff]  ;;  %s214_s1 = smov [#allocation6]  }
   0x9   :  { %152 = vmatpush.msra.mxu2 %v83_v1  ;;  %147 = vmatmul.msk.f32.vlgmr.msra.gmra.mxu3 %vm41_vm1, %v39_v3  ;;  %v81_v6 = vld [vmem:[#allocation3] sm:$0xff]  ;;  %v80_v7 = vld [vmem:[%s267_s0 + $0x8] sm:$0xff]  ;;  %s130_s30 = sshll.u32 %s214_s1, 4  ;;  %s131_s30 = int_to_ptr.vmem [resolvable:$true] %s130_s30 }
   0xa   :  { %105 = vmatpush.msra.mxu1 %v83_v1  ;;  %146 = vmatmul.msk.f32.vlgmr.msra.gmra.mxu0 %vm41_vm1, %v38_v5  ;;  %v79_v8 = vld [vmem:[%s267_s0] sm:$0xff] }
   0xb   :  { %153 = vmatpush.msra.mxu2 %v82_v4 }
   0xc   :  { %106 = vmatpush.msra.mxu1 %v82_v4 }
   0xd   :  { %154 = vmatpush.msra.mxu2 %v81_v6 }
   0xe   :  { %149 = vmatmul.msk.f32.vlgmr.msra.gmra.mxu2 %vm85_vm2, %v80_v7  ;;  %107 = vmatpush.msra.mxu1 %v81_v6 }
   0xf   :  { %148 = vmatmul.msk.f32.vlgmr.msra.gmra.mxu1 %vm85_vm2, %v79_v8 }
  0x87   :  { %v69_v9 = vpop.f32.mrf.mxu0 }
  0x8c   :  { %v109_v10 = vpop.f32.mrf.mxu1  ;;  %v72_v12 = vpop.f32.mrf.mxu3 }
  0x8d   :  { %v115_v11 = vadd.f32 %v109_v10, %v69_v9 }
  0x8f   :  { %124 = vst [vmem:[#allocation6] sm:$0xff] %v115_v11 }
  0x91   :  { %v112_v13 = vpop.f32.mrf.mxu2 }
  0x92   :  { %v116_v14 = vadd.f32 %v112_v13, %v72_v12 }
  0x94   :  { %125 = vst [vmem:[#allocation6 + $0x8] sm:$0xff] %v116_v14 }
  0x95   :  { %138 = dma.vmem_to_hbm [thread:$0]  %s131_s30, 256, %s133_s7, [#allocation5], %s212_s20, %s212_s20, %s213_s21  }
  0x96   :  { %209 = dma.done.wait [#allocation5], 256  }
  0x97   :  { %210 = vsyncadd [#allocation5], 4294967040 }
  0x98   :  { %143 = vsyncpa [#allocation4], 1 }
  0x99   :  { %144 = vsyncpa [#allocation5], 1 }

</bundles_post_ra>
